<compile_context>
chip_gen: v7x
topology: tpu7x:2x2x1
jax: 0.10.0
libtpu: 0.0.40
codegen_flags: <defaults>
</compile_context>

<pallas_src>
import functools

import jax
import jax.numpy as jnp
from jax import lax
from jax.experimental import pallas as pl
from jax.experimental.pallas import tpu as pltpu


def _round_up(x, m):
    return ((x + m - 1) // m) * m


def mlp_kernel(x_ref, w_in_ref, b_in_ref, w_h_ref, b_h_ref,
               w_out_ref, b_out_ref, o_ref):
    # Input layer + ReLU (f32 accumulation on the MXU).
    h = jnp.dot(x_ref[...], w_in_ref[...], preferred_element_type=jnp.float32)
    h = jnp.maximum(h + b_in_ref[...], 0.0)

    # Hidden layers: register-carried activation, fully unrolled (static L).
    num_hidden_layers = w_h_ref.shape[0]

    def body(l, h):
        z = jnp.dot(h, w_h_ref[l], preferred_element_type=jnp.float32)
        return jnp.maximum(z + b_h_ref[l], 0.0)

    h = lax.fori_loop(0, num_hidden_layers, body, h, unroll=True)

    # Output layer (no activation), lane-dense (padded) store.
    out = jnp.dot(h, w_out_ref[...], preferred_element_type=jnp.float32)
    o_ref[...] = (out + b_out_ref[...]).astype(o_ref.dtype)


@functools.partial(jax.jit, static_argnames=("block_b",))
def dense_forward(x, params, *, block_b=256):
    """x: (B, inputs) float32. params: dict of weights/biases (see init_params)."""
    w_in, b_in = params["w_in"], params["b_in"]
    w_h, b_h = params["w_h"], params["b_h"]
    w_out, b_out = params["w_out"], params["b_out"]

    B, I = x.shape
    H = w_in.shape[1]
    L = w_h.shape[0]
    O = w_out.shape[1]

    # Pad feature dims to lane width (128) and batch to the tile size.
    H_pad = _round_up(H, 128)
    O_pad = _round_up(O, 128)
    TB = min(block_b, _round_up(B, 8))          # batch tile (sublane-aligned)
    B_pad = _round_up(B, TB)

    xp = jnp.pad(x, ((0, B_pad - B), (0, 0)))
    w_in_p = jnp.pad(w_in, ((0, 0), (0, H_pad - H)))
    b_in_p = jnp.pad(b_in, ((0, 0), (0, H_pad - H)))
    w_h_p = jnp.pad(w_h, ((0, 0), (0, H_pad - H), (0, H_pad - H)))
    b_h_p = jnp.pad(b_h, ((0, 0), (0, 0), (0, H_pad - H)))
    w_out_p = jnp.pad(w_out, ((0, H_pad - H), (0, O_pad - O)))
    b_out_p = jnp.pad(b_out, ((0, 0), (0, O_pad - O)))

    grid = (B_pad // TB,)

    out_padded = pl.pallas_call(
        mlp_kernel,
        out_shape=jax.ShapeDtypeStruct((B_pad, O_pad), x.dtype),
        grid_spec=pltpu.PrefetchScalarGridSpec(
            num_scalar_prefetch=0,
            grid=grid,
            in_specs=[
                # activations: tiled over batch
                pl.BlockSpec((TB, I), lambda i: (i, 0)),
                # weights/biases: whole array, constant block -> VMEM-resident
                pl.BlockSpec((I, H_pad), lambda i: (0, 0)),
                pl.BlockSpec((1, H_pad), lambda i: (0, 0)),
                pl.BlockSpec((L, H_pad, H_pad), lambda i: (0, 0, 0)),
                pl.BlockSpec((L, 1, H_pad), lambda i: (0, 0, 0)),
                pl.BlockSpec((H_pad, O_pad), lambda i: (0, 0)),
                pl.BlockSpec((1, O_pad), lambda i: (0, 0)),
            ],
            out_specs=pl.BlockSpec((TB, O_pad), lambda i: (i, 0)),
        ),
        compiler_params=pltpu.CompilerParams(
            dimension_semantics=("parallel",),
            vmem_limit_bytes=48 * 1024 * 1024,   # fits v7x's 64 MiB physical VMEM
        ),
    )(xp, w_in_p, b_in_p, w_h_p, b_h_p, w_out_p, b_out_p)

    return out_padded[:B, :O]


def init_params(key, inputs, hidden_size, hidden_layers, outputs):
    """Deterministic init mimicking nn.Linear's U(-1/sqrt(fan_in), 1/sqrt(fan_in))."""
    ks = jax.random.split(key, 6)

    def lin_init(kw, kb, fan_in, fan_out):
        bound = 1.0 / jnp.sqrt(jnp.float32(fan_in))
        w = jax.random.uniform(kw, (fan_in, fan_out), jnp.float32, -bound, bound)
        b = jax.random.uniform(kb, (1, fan_out), jnp.float32, -bound, bound)
        return w, b

    w_in, b_in = lin_init(ks[0], ks[1], inputs, hidden_size)

    kws = jax.random.split(ks[2], hidden_layers)
    kbs = jax.random.split(ks[3], hidden_layers)
    w_h = jnp.stack([
        lin_init(kws[l], kbs[l], hidden_size, hidden_size)[0]
        for l in range(hidden_layers)
    ])                                                    # (L, H, H)
    b_h = jnp.stack([
        lin_init(kws[l], kbs[l], hidden_size, hidden_size)[1]
        for l in range(hidden_layers)
    ])                                                    # (L, 1, H)

    w_out, b_out = lin_init(ks[4], ks[5], hidden_size, outputs)

    return {"w_in": w_in, "b_in": b_in, "w_h": w_h, "b_h": b_h,
            "w_out": w_out, "b_out": b_out}


def dense_ref(x, params):
    """Pure-JAX reference of the PyTorch forward."""
    h = jnp.maximum(x @ params["w_in"] + params["b_in"], 0.0)
    for l in range(params["w_h"].shape[0]):
        h = jnp.maximum(h @ params["w_h"][l] + params["b_h"][l], 0.0)
    return h @ params["w_out"] + params["b_out"]


if __name__ == "__main__":
    # Small shapes consistent with the module: Dense(inputs=4, hidden_size=32,
    # hidden_layers=2, outputs=1) applied to a (batch=8, inputs=4) input.
    B, INPUTS, HIDDEN, LAYERS, OUTPUTS = 8, 4, 32, 2, 1

    key = jax.random.PRNGKey(0)
    kx, kp = jax.random.split(key)
    x = jax.random.normal(kx, (B, INPUTS), jnp.float32)
    params = init_params(kp, INPUTS, HIDDEN, LAYERS, OUTPUTS)

    y = dense_forward(x, params)
    y = jax.block_until_ready(y)

    y_ref = dense_ref(x, params)
    assert y.shape == (B, OUTPUTS)
    assert jnp.allclose(y, y_ref, atol=1e-5, rtol=1e-5)

    print("KERNEL_OK")
</pallas_src>

<mosaic_0001>
module attributes {stable_mosaic.version = 11 : i64} {
  func.func @mlp_kernel(%arg0: i32, %arg1: memref<8x4xf32, #tpu.memory_space<vmem>>, %arg2: memref<4x128xf32, #tpu.memory_space<vmem>>, %arg3: memref<1x128xf32, #tpu.memory_space<vmem>>, %arg4: memref<2x128x128xf32, #tpu.memory_space<vmem>>, %arg5: memref<2x1x128xf32, #tpu.memory_space<vmem>>, %arg6: memref<128x128xf32, #tpu.memory_space<vmem>>, %arg7: memref<1x128xf32, #tpu.memory_space<vmem>>, %arg8: memref<8x128xf32, #tpu.memory_space<vmem>>) attributes {dimension_semantics = [#tpu.dimension_semantics<parallel>], iteration_bounds = array<i64: 1>, scalar_prefetch = 0 : i64, scratch_operands = 0 : i64, tpu.core_type = #tpu.core_type<tc>, window_params = [{transform_indices = @transform_0, window_bounds = array<i64: 8, 4>}, {pipeline_mode = #tpu.pipeline_mode<synchronous>, transform_indices = @transform_1, window_bounds = array<i64: 4, 128>}, {pipeline_mode = #tpu.pipeline_mode<synchronous>, transform_indices = @transform_2, window_bounds = array<i64: 1, 128>}, {pipeline_mode = #tpu.pipeline_mode<synchronous>, transform_indices = @transform_3, window_bounds = array<i64: 2, 128, 128>}, {pipeline_mode = #tpu.pipeline_mode<synchronous>, transform_indices = @transform_4, window_bounds = array<i64: 2, 1, 128>}, {pipeline_mode = #tpu.pipeline_mode<synchronous>, transform_indices = @transform_5, window_bounds = array<i64: 128, 128>}, {pipeline_mode = #tpu.pipeline_mode<synchronous>, transform_indices = @transform_6, window_bounds = array<i64: 1, 128>}, {transform_indices = @transform_7, window_bounds = array<i64: 8, 128>}]} {
    %c0 = arith.constant 0 : index
    %c0_0 = arith.constant 0 : index
    %0 = vector.load %arg1[%c0, %c0_0] : memref<8x4xf32, #tpu.memory_space<vmem>>, vector<8x4xf32>
    %c0_1 = arith.constant 0 : index
    %c0_2 = arith.constant 0 : index
    %1 = vector.load %arg2[%c0_1, %c0_2] : memref<4x128xf32, #tpu.memory_space<vmem>>, vector<4x128xf32>
    %cst = arith.constant dense<0.000000e+00> : vector<8x128xf32>
    %2 = tpu.matmul %0, %1, %cst {dimension_numbers = #tpu.dot_dimension_numbers<[1], [0], [0], [1], [0, 0, 1, 1], [], []>} : vector<8x4xf32>, vector<4x128xf32>, vector<8x128xf32> -> vector<8x128xf32>
    %c0_3 = arith.constant 0 : index
    %c0_4 = arith.constant 0 : index
    %3 = vector.load %arg3[%c0_3, %c0_4] : memref<1x128xf32, #tpu.memory_space<vmem>>, vector<1x128xf32>
    %4 = vector.broadcast %3 : vector<1x128xf32> to vector<8x128xf32>
    %5 = arith.addf %2, %4 : vector<8x128xf32>
    %cst_5 = arith.constant 0.000000e+00 : f32
    %6 = vector.broadcast %cst_5 : f32 to vector<8x128xf32>
    %7 = arith.maximumf %5, %6 : vector<8x128xf32>
    %c0_i32 = arith.constant 0 : i32
    %8 = arith.index_cast %c0_i32 : i32 to index
    %c0_6 = arith.constant 0 : index
    %c0_7 = arith.constant 0 : index
    %9 = vector.load %arg4[%8, %c0_6, %c0_7] : memref<2x128x128xf32, #tpu.memory_space<vmem>>, vector<1x128x128xf32>
    %10 = vector.shape_cast %9 : vector<1x128x128xf32> to vector<128x128xf32>
    %cst_8 = arith.constant dense<0.000000e+00> : vector<8x128xf32>
    %11 = tpu.matmul %7, %10, %cst_8 {dimension_numbers = #tpu.dot_dimension_numbers<[1], [0], [0], [1], [0, 0, 1, 1], [], []>} : vector<8x128xf32>, vector<128x128xf32>, vector<8x128xf32> -> vector<8x128xf32>
    %12 = arith.index_cast %c0_i32 : i32 to index
    %c0_9 = arith.constant 0 : index
    %c0_10 = arith.constant 0 : index
    %13 = vector.load %arg5[%12, %c0_9, %c0_10] : memref<2x1x128xf32, #tpu.memory_space<vmem>>, vector<1x1x128xf32>
    %14 = vector.shape_cast %13 : vector<1x1x128xf32> to vector<1x128xf32>
    %15 = vector.broadcast %14 : vector<1x128xf32> to vector<8x128xf32>
    %16 = arith.addf %11, %15 : vector<8x128xf32>
    %cst_11 = arith.constant 0.000000e+00 : f32
    %17 = vector.broadcast %cst_11 : f32 to vector<8x128xf32>
    %18 = arith.maximumf %16, %17 : vector<8x128xf32>
    %c1_i32 = arith.constant 1 : i32
    %19 = arith.index_cast %c1_i32 : i32 to index
    %c0_12 = arith.constant 0 : index
    %c0_13 = arith.constant 0 : index
    %20 = vector.load %arg4[%19, %c0_12, %c0_13] : memref<2x128x128xf32, #tpu.memory_space<vmem>>, vector<1x128x128xf32>
    %21 = vector.shape_cast %20 : vector<1x128x128xf32> to vector<128x128xf32>
    %cst_14 = arith.constant dense<0.000000e+00> : vector<8x128xf32>
    %22 = tpu.matmul %18, %21, %cst_14 {dimension_numbers = #tpu.dot_dimension_numbers<[1], [0], [0], [1], [0, 0, 1, 1], [], []>} : vector<8x128xf32>, vector<128x128xf32>, vector<8x128xf32> -> vector<8x128xf32>
    %23 = arith.index_cast %c1_i32 : i32 to index
    %c0_15 = arith.constant 0 : index
    %c0_16 = arith.constant 0 : index
    %24 = vector.load %arg5[%23, %c0_15, %c0_16] : memref<2x1x128xf32, #tpu.memory_space<vmem>>, vector<1x1x128xf32>
    %25 = vector.shape_cast %24 : vector<1x1x128xf32> to vector<1x128xf32>
    %26 = vector.broadcast %25 : vector<1x128xf32> to vector<8x128xf32>
    %27 = arith.addf %22, %26 : vector<8x128xf32>
    %cst_17 = arith.constant 0.000000e+00 : f32
    %28 = vector.broadcast %cst_17 : f32 to vector<8x128xf32>
    %29 = arith.maximumf %27, %28 : vector<8x128xf32>
    %c2_i32 = arith.constant 2 : i32
    %c0_18 = arith.constant 0 : index
    %c0_19 = arith.constant 0 : index
    %30 = vector.load %arg6[%c0_18, %c0_19] : memref<128x128xf32, #tpu.memory_space<vmem>>, vector<128x128xf32>
    %cst_20 = arith.constant dense<0.000000e+00> : vector<8x128xf32>
    %31 = tpu.matmul %29, %30, %cst_20 {dimension_numbers = #tpu.dot_dimension_numbers<[1], [0], [0], [1], [0, 0, 1, 1], [], []>} : vector<8x128xf32>, vector<128x128xf32>, vector<8x128xf32> -> vector<8x128xf32>
    %c0_21 = arith.constant 0 : index
    %c0_22 = arith.constant 0 : index
    %32 = vector.load %arg7[%c0_21, %c0_22] : memref<1x128xf32, #tpu.memory_space<vmem>>, vector<1x128xf32>
    %33 = vector.broadcast %32 : vector<1x128xf32> to vector<8x128xf32>
    %34 = arith.addf %31, %33 : vector<8x128xf32>
    %c0_23 = arith.constant 0 : index
    %c0_24 = arith.constant 0 : index
    %35 = vector.load %arg8[%c0_23, %c0_24] : memref<8x128xf32, #tpu.memory_space<vmem>>, vector<8x128xf32>
    tpu.vector_store %arg8[%c0_23, %c0_24], %34 {strides = array<i32>} : memref<8x128xf32, #tpu.memory_space<vmem>>, vector<8x128xf32>,
    return
  }
  func.func @transform_0(%arg0: i32) -> (i32, i32) {
    %c0_i32 = arith.constant 0 : i32
    %c0_i32_0 = arith.constant 0 : i32
    return %arg0, %c0_i32 : i32, i32
  }
  func.func @transform_1(%arg0: i32) -> (i32, i32) {
    %c0_i32 = arith.constant 0 : i32
    %c0_i32_0 = arith.constant 0 : i32
    %c0_i32_1 = arith.constant 0 : i32
    return %c0_i32, %c0_i32_0 : i32, i32
  }
  func.func @transform_2(%arg0: i32) -> (i32, i32) {
    %c0_i32 = arith.constant 0 : i32
    %c0_i32_0 = arith.constant 0 : i32
    %c0_i32_1 = arith.constant 0 : i32
    return %c0_i32, %c0_i32_0 : i32, i32
  }
  func.func @transform_3(%arg0: i32) -> (i32, i32, i32) {
    %c0_i32 = arith.constant 0 : i32
    %c0_i32_0 = arith.constant 0 : i32
    %c0_i32_1 = arith.constant 0 : i32
    %c0_i32_2 = arith.constant 0 : i32
    return %c0_i32, %c0_i32_0, %c0_i32_1 : i32, i32, i32
  }
  func.func @transform_4(%arg0: i32) -> (i32, i32, i32) {
    %c0_i32 = arith.constant 0 : i32
    %c0_i32_0 = arith.constant 0 : i32
    %c0_i32_1 = arith.constant 0 : i32
    %c0_i32_2 = arith.constant 0 : i32
    return %c0_i32, %c0_i32_0, %c0_i32_1 : i32, i32, i32
  }
  func.func @transform_5(%arg0: i32) -> (i32, i32) {
    %c0_i32 = arith.constant 0 : i32
    %c0_i32_0 = arith.constant 0 : i32
    %c0_i32_1 = arith.constant 0 : i32
    return %c0_i32, %c0_i32_0 : i32, i32
  }
  func.func @transform_6(%arg0: i32) -> (i32, i32) {
    %c0_i32 = arith.constant 0 : i32
    %c0_i32_0 = arith.constant 0 : i32
    %c0_i32_1 = arith.constant 0 : i32
    return %c0_i32, %c0_i32_0 : i32, i32
  }
  func.func @transform_7(%arg0: i32) -> (i32, i32) {
    %c0_i32 = arith.constant 0 : i32
    %c0_i32_0 = arith.constant 0 : i32
    return %arg0, %c0_i32 : i32, i32
  }
}

</mosaic_0001>

<bundles_post_ra>
// kernel: dense_forward.1
= control target key start
LH: loop header
LB: loop body
LE: loop exit
PB: predicated region body
PF: predicated region fallthrough
CT: control target
= control target key end

     0   :  { %vm39_vm0 = vcmask 1043456   ;;  %vm35_vm1 = vcmask 31744   ;;  %v663_v0 = vmov 0.0   ;;  %vm664_vm2 = vmmov 0   ;;  %s904_s1 = inlined_call_operand.vmem [shape: f32[4,128], index: 1, kind: input, shape index: {}]   ;;  %s905_s0 = inlined_call_operand.vmem [shape: f32[8,4], index: 0, kind: input, shape index: {}]   ;;  %s906_s3 = inlined_call_operand.vmem [shape: f32[2,128,128], index: 3, kind: input, shape index: {}]   ;;  %s907_s2 = inlined_call_operand.vmem [shape: f32[1,128], index: 2, kind: input, shape index: {}]   ;;  %s908_s5 = inlined_call_operand.vmem [shape: f32[128,128], index: 5, kind: input, shape index: {}]   ;;  %s909_s4 = inlined_call_operand.vmem [shape: f32[2,1,128], index: 4, kind: input, shape index: {}]   ;;  %s910_s6 = inlined_call_operand.vmem [shape: f32[1,128], index: 6, kind: input, shape index: {}]   ;;  %s911_s7 = inlined_call_operand.vmem [shape: f32[8,128], index: 7, kind: output, shape index: {}]  }
   0x1   :  { %478 = vmatprep.subr.mxu0 %v663_v0  ;;  %v27_v1 = vld [vmem:[%s904_s1] sm:$0xf]  ;;  %480 = vmatprep.mubr.msk.f32.mxu0 %vm664_vm2, %v663_v0  ;;  %v665_v4 = vmov 0.0|0.0   ;;  %v115_v5 = vld [vmem:[%s906_s3 + $0x8] sm:$0xff]  ;;  %v116_v6 = vld [vmem:[%s906_s3 + $0x10] sm:$0xff] }
   0x2   :  { %v26_v2 = vld [vmem:[%s905_s0] sm:$0xff]  ;;  %479 = vmatpush3.msk.msra.mxu0 %vm39_vm0, %v27_v1  ;;  %588 = vmatprep.subr.bf16.mxu1 %v665_v4  ;;  %v117_v7 = vld [vmem:[%s906_s3 + $0x18] sm:$0xff]  ;;  %v119_v11 = vld [vmem:[%s906_s3 + $0x28] sm:$0xff] }
   0x3   :  { %v114_v3 = vld [vmem:[%s906_s3] sm:$0xff]  ;;  %481 = vmatmul.mubr.msk.f32.vlgmr.msra.gmra.mrb[0].mxu0 %vm35_vm1, %v26_v2  ;;  %515 = vmatprep.mubr.msk.f32.mxu1 %vm664_vm2, %v663_v0  ;;  %v592_v9 = vpack.c.bf16 %v117_v7, %v116_v6  ;;  %v120_v13 = vld [vmem:[%s906_s3 + $0x30] sm:$0xff]  ;;  %v121_v14 = vld [vmem:[%s906_s3 + $0x38] sm:$0xff] }
   0x4   :  { %v589_v8 = vpack.c.bf16 %v115_v5, %v114_v3  ;;  %612 = vmatprep.subr.bf16.mxu0 %v665_v4  ;;  %550 = vmatprep.mubr.msk.f32.mxu0 %vm664_vm2, %v663_v0  ;;  %v118_v10 = vld [vmem:[%s906_s3 + $0x20] sm:$0xff]  ;;  %v598_v15 = vpack.c.bf16 %v121_v14, %v120_v13  ;;  %v123_v17 = vld [vmem:[%s906_s3 + $0x48] sm:$0xff]  ;;  %v124_v19 = vld [vmem:[%s906_s3 + $0x50] sm:$0xff] }
   0x5   :  { %v595_v12 = vpack.c.bf16 %v119_v11, %v118_v10  ;;  %v122_v16 = vld [vmem:[%s906_s3 + $0x40] sm:$0xff]  ;;  %v125_v20 = vld [vmem:[%s906_s3 + $0x58] sm:$0xff]  ;;  %v127_v23 = vld [vmem:[%s906_s3 + $0x68] sm:$0xff] }
   0x6   :  { %590 = vmatpush3.bf16.msra.mxu1 %v589_v8  ;;  %v601_v18 = vpack.c.bf16 %v123_v17, %v122_v16  ;;  %v604_v21 = vpack.c.bf16 %v125_v20, %v124_v19  ;;  %v126_v22 = vld [vmem:[%s906_s3 + $0x60] sm:$0xff]  ;;  %v128_v25 = vld [vmem:[%s906_s3 + $0x70] sm:$0xff]  ;;  %v129_v26 = vld [vmem:[%s906_s3 + $0x78] sm:$0xff] }
   0x7   :  { %591 = vmatprep.subr.bf16.mxu1 %v665_v4  ;;  %v607_v24 = vpack.c.bf16 %v127_v23, %v126_v22  ;;  %v610_v27 = vpack.c.bf16 %v129_v26, %v128_v25  ;;  %v406_v28 = vld [vmem:[%s906_s3 + $0x80] sm:$0xff]  ;;  %v407_v29 = vld [vmem:[%s906_s3 + $0x88] sm:$0xff]  ;;  %v408_v30 = vld [vmem:[%s906_s3 + $0x90] sm:$0xff] }
   0x8   :  { %v613_v31 = vpack.c.bf16 %v407_v29, %v406_v28  ;;  %v409_v32 = vld [vmem:[%s906_s3 + $0x98] sm:$0xff]  ;;  %v410_v34 = vld [vmem:[%s906_s3 + $0xa0] sm:$0xff]  ;;  %v411_v35 = vld [vmem:[%s906_s3 + $0xa8] sm:$0xff] }
   0x9   :  { %v616_v33 = vpack.c.bf16 %v409_v32, %v408_v30  ;;  %v619_v36 = vpack.c.bf16 %v411_v35, %v410_v34  ;;  %v412_v37 = vld [vmem:[%s906_s3 + $0xb0] sm:$0xff]  ;;  %v413_v38 = vld [vmem:[%s906_s3 + $0xb8] sm:$0xff]  ;;  %v414_v40 = vld [vmem:[%s906_s3 + $0xc0] sm:$0xff] }
   0xa   :  { %593 = vmatpush3.bf16.msra.mxu1 %v592_v9  ;;  %614 = vmatpush3.bf16.msra.mxu0 %v613_v31  ;;  %v622_v39 = vpack.c.bf16 %v413_v38, %v412_v37  ;;  %v415_v41 = vld [vmem:[%s906_s3 + $0xc8] sm:$0xff]  ;;  %v416_v43 = vld [vmem:[%s906_s3 + $0xd0] sm:$0xff]  ;;  %v417_v44 = vld [vmem:[%s906_s3 + $0xd8] sm:$0xff] }
   0xb   :  { %594 = vmatprep.subr.bf16.mxu1 %v665_v4  ;;  %615 = vmatprep.subr.bf16.mxu0 %v665_v4  ;;  %v625_v42 = vpack.c.bf16 %v415_v41, %v414_v40  ;;  %v628_v45 = vpack.c.bf16 %v417_v44, %v416_v43  ;;  %v418_v46 = vld [vmem:[%s906_s3 + $0xe0] sm:$0xff]  ;;  %v419_v47 = vld [vmem:[%s906_s3 + $0xe8] sm:$0xff]  ;;  %v420_v54 = vld [vmem:[%s906_s3 + $0xf0] sm:$0xff] }
   0xc   :  { %v631_v48 = vpack.c.bf16 %v419_v47, %v418_v46  ;;  %v402_v49 = vld [vmem:[%s907_s2] ss:$0 sm:$0xff]  ;;  %v421_v55 = vld [vmem:[%s906_s3 + $0xf8] sm:$0xff]  ;;  %v305_v58 = vld [vmem:[%s908_s5 + $0x8] sm:$0xff] }
   0xd   :  { %v634_v56 = vpack.c.bf16 %v421_v55, %v420_v54  ;;  %v304_v57 = vld [vmem:[%s908_s5] sm:$0xff]  ;;  %v306_v59 = vld [vmem:[%s908_s5 + $0x10] sm:$0xff]  ;;  %v307_v61 = vld [vmem:[%s908_s5 + $0x18] sm:$0xff] }
   0xe   :  { %596 = vmatpush3.bf16.msra.mxu1 %v595_v12  ;;  %617 = vmatpush3.bf16.msra.mxu0 %v616_v33  ;;  %v637_v60 = vpack.c.bf16 %v305_v58, %v304_v57  ;;  %v640_v62 = vpack.c.bf16 %v307_v61, %v306_v59  ;;  %v308_v63 = vld [vmem:[%s908_s5 + $0x20] sm:$0xff]  ;;  %v310_v2 = vld [vmem:[%s908_s5 + $0x30] sm:$0xff]  ;;  %v311_v3 = vld [vmem:[%s908_s5 + $0x38] sm:$0xff] }
   0xf   :  { %597 = vmatprep.subr.bf16.mxu1 %v665_v4  ;;  %618 = vmatprep.subr.bf16.mxu0 %v665_v4  ;;  %v646_v5 = vpack.c.bf16 %v311_v3, %v310_v2  ;;  %v312_v6 = vld [vmem:[%s908_s5 + $0x40] sm:$0xff]  ;;  %v313_v7 = vld [vmem:[%s908_s5 + $0x48] sm:$0xff]  ;;  %v314_v9 = vld [vmem:[%s908_s5 + $0x50] sm:$0xff] }
  0x10   :  { %v649_v8 = vpack.c.bf16 %v313_v7, %v312_v6  ;;  %v315_v10 = vld [vmem:[%s908_s5 + $0x58] sm:$0xff]  ;;  %v316_v12 = vld [vmem:[%s908_s5 + $0x60] sm:$0xff]  ;;  %v317_v13 = vld [vmem:[%s908_s5 + $0x68] sm:$0xff] }
  0x11   :  { %v652_v11 = vpack.c.bf16 %v315_v10, %v314_v9  ;;  %v655_v14 = vpack.c.bf16 %v317_v13, %v316_v12  ;;  %v318_v20 = vld [vmem:[%s908_s5 + $0x70] sm:$0xff] }
  0x12   :  { %599 = vmatpush3.bf16.msra.mxu1 %v598_v15  ;;  %620 = vmatpush3.bf16.msra.mxu0 %v619_v36  ;;  %v405_v15 = vld [vmem:[%s909_s4] ss:$0 sm:$0xff] }
  0x13   :  { %600 = vmatprep.subr.bf16.mxu1 %v665_v4  ;;  %621 = vmatprep.subr.bf16.mxu0 %v665_v4 }
  0x16   :  { %602 = vmatpush3.bf16.msra.mxu1 %v601_v18  ;;  %623 = vmatpush3.bf16.msra.mxu0 %v622_v39 }
  0x17   :  { %603 = vmatprep.subr.bf16.mxu1 %v665_v4  ;;  %624 = vmatprep.subr.bf16.mxu0 %v665_v4 }
  0x1a   :  { %605 = vmatpush3.bf16.msra.mxu1 %v604_v21  ;;  %626 = vmatpush3.bf16.msra.mxu0 %v625_v42  ;;  %v319_v21 = vld [vmem:[%s908_s5 + $0x78] sm:$0xff] }
  0x1b   :  { %606 = vmatprep.subr.bf16.mxu1 %v665_v4  ;;  %627 = vmatprep.subr.bf16.mxu0 %v665_v4  ;;  %v658_v22 = vpack.c.bf16 %v319_v21, %v318_v20 }
  0x1e   :  { %608 = vmatpush3.bf16.msra.mxu1 %v607_v24  ;;  %629 = vmatpush3.bf16.msra.mxu0 %v628_v45 }
  0x1f   :  { %609 = vmatprep.subr.bf16.mxu1 %v665_v4  ;;  %630 = vmatprep.subr.bf16.mxu0 %v665_v4 }
  0x22   :  { %611 = vmatpush3.bf16.msra.mxu1 %v610_v27  ;;  %632 = vmatpush3.bf16.msra.mxu0 %v631_v48  ;;  %v424_v27 = vld [vmem:[%s910_s6] ss:$0 sm:$0xff] }
  0x23   :  { %636 = vmatprep.subr.bf16.mxu1 %v665_v4  ;;  %633 = vmatprep.subr.bf16.mxu0 %v665_v4 }
  0x26   :  { %635 = vmatpush3.bf16.msra.mxu0 %v634_v56 }
  0xd6   :  { %v109_v50 = vpop.f32.mrb[0].mxu0 }
  0xd7   :  { %v110_v51 = vadd.f32 %v402_v49, %v109_v50  ;;  %v482_v52 = vpop.f32.mrb[1].mxu0 }
  0xd9   :  { %v113_v53 = vmax.f32 %v110_v51, 0.0 }
  0xdb   :  { %516 = vmatmul.mubr.f32.vlgmr.msra.gmra.mrb[0].mxu1 %v113_v53 }
  0xdc   :  { %585 = vmatprep.mubr.msk.f32.mxu1 %vm664_vm2, %v663_v0  ;;  %638 = vmatpush3.bf16.msra.mxu1 %v637_v60  ;;  %v309_v0 = vld [vmem:[%s908_s5 + $0x28] sm:$0xff] }
  0xdd   :  { %639 = vmatprep.subr.bf16.mxu1 %v665_v4  ;;  %v643_v1 = vpack.c.bf16 %v309_v0, %v308_v63 }
  0xe0   :  { %641 = vmatpush3.bf16.msra.mxu1 %v640_v62 }
  0xe1   :  { %642 = vmatprep.subr.bf16.mxu1 %v665_v4 }
  0xe4   :  { %644 = vmatpush3.bf16.msra.mxu1 %v643_v1 }
  0xe5   :  { %645 = vmatprep.subr.bf16.mxu1 %v665_v4 }
  0xe8   :  { %647 = vmatpush3.bf16.msra.mxu1 %v646_v5 }
  0xe9   :  { %648 = vmatprep.subr.bf16.mxu1 %v665_v4 }
  0xec   :  { %650 = vmatpush3.bf16.msra.mxu1 %v649_v8 }
  0xed   :  { %651 = vmatprep.subr.bf16.mxu1 %v665_v4 }
  0xf0   :  { %653 = vmatpush3.bf16.msra.mxu1 %v652_v11 }
  0xf1   :  { %654 = vmatprep.subr.bf16.mxu1 %v665_v4 }
  0xf4   :  { %656 = vmatpush3.bf16.msra.mxu1 %v655_v14 }
  0xf5   :  { %657 = vmatprep.subr.bf16.mxu1 %v665_v4  ;;  %v423_v4 = vld [vmem:[%s909_s4 + $0x1] ss:$0 sm:$0xff] }
  0xf8   :  { %659 = vmatpush3.bf16.msra.mxu1 %v658_v22 }
 0x1ae   :  { %v203_v16 = vpop.f32.mrb[0].mxu1 }
 0x1af   :  { %v204_v17 = vadd.f32 %v405_v15, %v203_v16  ;;  %v517_v18 = vpop.f32.mrb[1].mxu1 }
 0x1b1   :  { %v207_v19 = vmax.f32 %v204_v17, 0.0 }
 0x1b3   :  { %551 = vmatmul.mubr.f32.vlgmr.msra.gmra.mrb[2].mxu0 %v207_v19 }
 0x286   :  { %v299_v23 = vpop.f32.mrb[2].mxu0 }
 0x287   :  { %v300_v24 = vadd.f32 %v423_v4, %v299_v23  ;;  %v552_v25 = vpop.f32.mrb[3].mxu0 }
 0x289   :  { %v303_v26 = vmax.f32 %v300_v24, 0.0 }
 0x28b   :  { %586 = vmatmul.mubr.f32.vlgmr.msra.gmra.mrb[2].mxu1 %v303_v26 }
 0x35e   :  { %v393_v28 = vpop.f32.mrb[2].mxu1 }
 0x35f   :  { %v394_v29 = vadd.f32 %v424_v27, %v393_v28  ;;  %v587_v30 = vpop.f32.mrb[3].mxu1 }
 0x361   :  { %397 = vst [vmem:[%s911_s7] sm:$0xff] %v394_v29 }

</bundles_post_ra>
